<compile_context>
chip_gen: v5e
topology: v5e:2x2
jax: 0.10.0
libtpu: 0.0.40
codegen_flags: <defaults>
</compile_context>

<pallas_src>
import functools

import jax
import jax.numpy as jnp
from jax.experimental import pallas as pl
from jax.experimental.pallas import tpu as pltpu


def _silu(x):
    return x * jax.nn.sigmoid(x)


def _pick_tn(N, k, F, vmem_budget_bytes=8 << 20, cap=512):
    """Largest node tile that divides N, is a multiple of 8, stays within a
    conservative per-block VMEM budget (safe even with v7x's 32 MiB scoped
    default), and — when possible — leaves >= 2 grid steps so the parallel
    grid axis can be split across both v7x TensorCores / megacore."""
    best_any = None
    best_multi = None
    for tn in range(8, min(N, cap) + 1, 8):
        if N % tn:
            continue
        te = tn * k
        # rough f32 per-step footprint: pooling matrix + double-buffered
        # (h_row, h_col, radial, h, out) blocks
        approx = 4 * (tn * te + 2 * (2 * te * F + te + 2 * tn * F))
        if approx > vmem_budget_bytes:
            break
        best_any = tn
        if N // tn >= 2:
            best_multi = tn
    if best_any is None:
        return N                       # tiny / awkward N: one full-array block
    return best_multi if best_multi is not None else best_any


def egcl_kernel(h_ref, hrow_ref, hcol_ref, radial_ref, pool_ref,
                w1a_ref, w1b_ref, w1r_ref, b1_ref,
                w2_ref, b2_ref,
                wg1_ref, bg1_ref, wg2_ref, bg2_ref,
                out_ref, *, matmul_dtype):
    f32 = jnp.float32

    # edge_mlp layer 1, concat-free:
    #   [h_row | h_col | radial] @ W1 == h_row@W1a + h_col@W1b + radial*w1_r
    # (the radial column is a [te,1]*[1,H] VPU broadcast-FMA, kept in f32)
    pre1 = (jnp.dot(hrow_ref[...], w1a_ref[...], preferred_element_type=f32)
            + jnp.dot(hcol_ref[...], w1b_ref[...], preferred_element_type=f32)
            + radial_ref[...] * w1r_ref[...]
            + b1_ref[...])
    e = _silu(pre1)

    # edge_mlp layer 2
    e = _silu(jnp.dot(e.astype(matmul_dtype), w2_ref[...],
                      preferred_element_type=f32) + b2_ref[...])

    # per-node sum of the k contiguous edge rows, as an MXU pooling matmul:
    #   agg[i] = sum_j [j // k == i] * e[j]
    agg = jnp.dot(pool_ref[...], e.astype(matmul_dtype),
                  preferred_element_type=f32)

    # node_gate: Linear -> ReLU -> Linear -> Sigmoid (elementwise stays f32)
    g = jnp.maximum(
        jnp.dot(agg.astype(matmul_dtype), wg1_ref[...],
                preferred_element_type=f32) + bg1_ref[...], 0.0)
    gate = jax.nn.sigmoid(
        jnp.dot(g.astype(matmul_dtype), wg2_ref[...],
                preferred_element_type=f32) + bg2_ref[...])

    # gated residual node update
    out_ref[...] = h_ref[...] + gate * agg
    # TODO(synk): if stores ever become the binding slot (H < 128 => masked vst),
    # present a lane-dense packed output layout instead of (tn, H).


def e_gcl_rm_node_forward(h, edge_index, coord, params, batch_size, k,
                          tn=None, matmul_dtype=jnp.float32):
    """Returns (h_out, coord, edge_attr=None), matching the PyTorch forward.

    matmul_dtype: dtype of the MXU operands (weights + gathered edge streams).
      f32 by default; jnp.bfloat16 is recommended on v6e/v5e (halves the
      dominant HBM streams; accumulation and all elementwise math stay f32,
      so v5e's f32-only VPU/EUP path is unaffected).
    """
    row, col = edge_index
    N, F = h.shape
    H = params["w2"].shape[1]
    assert F == H, "residual update requires input_nf == hidden_nf"
    assert row.shape[0] == N * k

    # node_model's edge_attr.view(B, -1, k, dim) semantics require the k edges
    # of node i to occupy flat rows [i*k, (i+1)*k); assert that layout here.
    assert bool(jnp.all(row == jnp.repeat(jnp.arange(N), k))), \
        "edges of node i must be contiguous at flat rows [i*k, (i+1)*k)"

    if tn is None:
        tn = _pick_tn(N, k, F)
    assert N % tn == 0
    te = tn * k                        # edge rows per node tile
    grid = (N // tn,)

    # ---- wrapper-side glue (XLA): gathers + radial --------------------------
    # radial is reduced here so no 3-lane coord_diff block ever enters the kernel.
    # TODO(synk): for large graphs, move the h[row]/h[col] gathers in-kernel
    # (scalar-prefetch row/col + VMEM-resident h or per-row DMA gather) to cut
    # HBM traffic by ~k x; at these sizes the XLA gather is not the bottleneck.
    h_row = h[row].astype(matmul_dtype)
    h_col = h[col].astype(matmul_dtype)
    coord_diff = coord[row] - coord[col]
    radial = jnp.sum(coord_diff * coord_diff, axis=1,
                     keepdims=True).astype(jnp.float32)

    # constant 0/1 pooling matrix: agg = pool @ edge_feat sums each node's k edges.
    pool = (jax.lax.broadcasted_iota(jnp.int32, (tn, te), 1) // k
            == jax.lax.broadcasted_iota(jnp.int32, (tn, te), 0)
            ).astype(matmul_dtype)

    # split edge_mlp layer-1 weight so no (2F+1)-wide operand ever exists.
    w1 = params["w1"]
    w1a = w1[:F].astype(matmul_dtype)               # multiplies h[row]
    w1b = w1[F:2 * F].astype(matmul_dtype)          # multiplies h[col]
    w1r = w1[2 * F:2 * F + 1].astype(jnp.float32)   # radial column (VPU FMA)
    w2 = params["w2"].astype(matmul_dtype)
    wg1 = params["wg1"].astype(matmul_dtype)
    wg2 = params["wg2"].astype(matmul_dtype)
    b1, b2 = params["b1"], params["b2"]
    bg1, bg2 = params["bg1"], params["bg2"]

    def whole(a):   # small parameter array: one resident block, never re-DMA'd
        return pl.BlockSpec(a.shape, lambda i: (0, 0))

    kern = functools.partial(egcl_kernel, matmul_dtype=matmul_dtype)

    h_out = pl.pallas_call(
        kern,
        out_shape=jax.ShapeDtypeStruct((N, H), jnp.float32),
        grid=grid,
        in_specs=[
            pl.BlockSpec((tn, F), lambda i: (i, 0)),   # h
            pl.BlockSpec((te, F), lambda i: (i, 0)),   # h[row]
            pl.BlockSpec((te, F), lambda i: (i, 0)),   # h[col]
            pl.BlockSpec((te, 1), lambda i: (i, 0)),   # radial
            whole(pool),
            whole(w1a), whole(w1b), whole(w1r), whole(b1),   # edge_mlp layer 1
            whole(w2), whole(b2),                            # edge_mlp layer 2
            whole(wg1), whole(bg1),                          # node_gate layer 1
            whole(wg2), whole(bg2),                          # node_gate layer 2
        ],
        out_specs=pl.BlockSpec((tn, H), lambda i: (i, 0)),
        compiler_params=pltpu.CompilerParams(
            dimension_semantics=("parallel",)),
    )(h, h_row, h_col, radial, pool,
      w1a, w1b, w1r, b1, w2, b2, wg1, bg1, wg2, bg2)

    return h_out, coord, None


def reference_forward(h, edge_index, coord, params, batch_size, k):
    """Pure-JAX reference mirroring the PyTorch module, for a sanity check."""
    row, col = edge_index
    coord_diff = coord[row] - coord[col]
    radial = jnp.sum(coord_diff ** 2, axis=1, keepdims=True)
    x = jnp.concatenate([h[row], h[col], radial], axis=1)
    e = jax.nn.silu(x @ params["w1"] + params["b1"])
    e = jax.nn.silu(e @ params["w2"] + params["b2"])
    H = e.shape[-1]
    agg = e.reshape(batch_size, -1, k, H).sum(axis=2).reshape(-1, H)
    g = jax.nn.relu(agg @ params["wg1"] + params["bg1"])
    gate = jax.nn.sigmoid(g @ params["wg2"] + params["bg2"])
    return h + gate * agg, coord, None


def _init_linear(kw, kb, fan_in, fan_out):
    # nn.Linear default init: U(-1/sqrt(fan_in), 1/sqrt(fan_in)); W stored [in, out].
    bound = 1.0 / float(fan_in) ** 0.5
    w = jax.random.uniform(kw, (fan_in, fan_out), jnp.float32, -bound, bound)
    b = jax.random.uniform(kb, (1, fan_out), jnp.float32, -bound, bound)
    return w, b


if __name__ == "__main__":
    key = jax.random.PRNGKey(0)
    keys = jax.random.split(key, 10)

    batch_size, n_nodes, k = 2, 8, 4
    F = H = 32                      # input_nf == output_nf == hidden_nf
    N = batch_size * n_nodes        # h: [batch * length, F]

    w1, b1 = _init_linear(keys[0], keys[1], 2 * F + 1, H)   # edge_mlp[0]
    w2, b2 = _init_linear(keys[2], keys[3], H, H)           # edge_mlp[2]
    wg1, bg1 = _init_linear(keys[4], keys[5], H, H)         # node_gate[0]
    wg2, bg2 = _init_linear(keys[6], keys[7], H, H)         # node_gate[2]
    # TODO(synk): `layer` (xavier, gain=0.001), coord_mlp and att_mlp are built
    # in __init__ but unused by this forward path (attention=False), so omitted.
    params = dict(w1=w1, b1=b1, w2=w2, b2=b2,
                  wg1=wg1, bg1=bg1, wg2=wg2, bg2=bg2)

    h = jax.random.normal(keys[8], (N, F), jnp.float32)
    coord = jax.random.normal(keys[9], (N, 3), jnp.float32)

    # Deterministic kNN-style edge list: node i (local index li in its sample)
    # connects to the next k nodes of the same sample; edges of node i occupy
    # flat rows [i*k, (i+1)*k), as assumed by node_model's .view(B, -1, k, dim).
    node_ids = jnp.arange(N)
    local = node_ids % n_nodes
    base = node_ids - local
    row = jnp.repeat(node_ids, k)
    offs = jnp.tile(jnp.arange(1, k + 1), N)
    col = jnp.repeat(base, k) + (jnp.repeat(local, k) + offs) % n_nodes
    edge_index = (row, col)

    h_ref, _, _ = reference_forward(h, edge_index, coord, params, batch_size, k)

    # f32 MXU-operand path (default; auto-picked tn).
    h_out, coord_out, edge_attr_out = e_gcl_rm_node_forward(
        h, edge_index, coord, params, batch_size, k)
    jax.block_until_ready(h_out)
    err_f32 = float(jnp.max(jnp.abs(h_out - h_ref)))
    # Tolerance covers TPU default-matmul-precision (bf16 input-rounding)
    # differences between the Pallas and XLA-reference paths; layout/indexing
    # bugs would show up orders of magnitude larger.
    assert err_f32 < 5e-2, f"f32 kernel mismatch vs reference: {err_f32}"

    # bf16 MXU-operand path (v6e/v5e recommendation); elementwise stays f32.
    h_out_bf16, _, _ = e_gcl_rm_node_forward(
        h, edge_index, coord, params, batch_size, k,
        matmul_dtype=jnp.bfloat16)
    jax.block_until_ready(h_out_bf16)
    err_bf16 = float(jnp.max(jnp.abs(h_out_bf16 - h_ref)))
    assert err_bf16 < 2e-1, f"bf16 kernel mismatch vs reference: {err_bf16}"

    print("KERNEL_OK")
</pallas_src>

<mosaic_0001>
module attributes {stable_mosaic.version = 11 : i64} {
  func.func @egcl_kernel(%arg0: i32, %arg1: memref<8x32xf32, #tpu.memory_space<vmem>>, %arg2: memref<32x32xf32, #tpu.memory_space<vmem>>, %arg3: memref<32x32xf32, #tpu.memory_space<vmem>>, %arg4: memref<32x1xf32, #tpu.memory_space<vmem>>, %arg5: memref<8x32xf32, #tpu.memory_space<vmem>>, %arg6: memref<32x32xf32, #tpu.memory_space<vmem>>, %arg7: memref<32x32xf32, #tpu.memory_space<vmem>>, %arg8: memref<1x32xf32, #tpu.memory_space<vmem>>, %arg9: memref<1x32xf32, #tpu.memory_space<vmem>>, %arg10: memref<32x32xf32, #tpu.memory_space<vmem>>, %arg11: memref<1x32xf32, #tpu.memory_space<vmem>>, %arg12: memref<32x32xf32, #tpu.memory_space<vmem>>, %arg13: memref<1x32xf32, #tpu.memory_space<vmem>>, %arg14: memref<32x32xf32, #tpu.memory_space<vmem>>, %arg15: memref<1x32xf32, #tpu.memory_space<vmem>>, %arg16: memref<8x32xf32, #tpu.memory_space<vmem>>) attributes {dimension_semantics = [#tpu.dimension_semantics<parallel>], iteration_bounds = array<i64: 2>, scalar_prefetch = 0 : i64, scratch_operands = 0 : i64, tpu.core_type = #tpu.core_type<tc>, window_params = [{transform_indices = @transform_0, window_bounds = array<i64: 8, 32>}, {transform_indices = @transform_1, window_bounds = array<i64: 32, 32>}, {transform_indices = @transform_2, window_bounds = array<i64: 32, 32>}, {transform_indices = @transform_3, window_bounds = array<i64: 32, 1>}, {pipeline_mode = #tpu.pipeline_mode<synchronous>, transform_indices = @transform_4, window_bounds = array<i64: 8, 32>}, {pipeline_mode = #tpu.pipeline_mode<synchronous>, transform_indices = @transform_5, window_bounds = array<i64: 32, 32>}, {pipeline_mode = #tpu.pipeline_mode<synchronous>, transform_indices = @transform_6, window_bounds = array<i64: 32, 32>}, {pipeline_mode = #tpu.pipeline_mode<synchronous>, transform_indices = @transform_7, window_bounds = array<i64: 1, 32>}, {pipeline_mode = #tpu.pipeline_mode<synchronous>, transform_indices = @transform_8, window_bounds = array<i64: 1, 32>}, {pipeline_mode = #tpu.pipeline_mode<synchronous>, transform_indices = @transform_9, window_bounds = array<i64: 32, 32>}, {pipeline_mode = #tpu.pipeline_mode<synchronous>, transform_indices = @transform_10, window_bounds = array<i64: 1, 32>}, {pipeline_mode = #tpu.pipeline_mode<synchronous>, transform_indices = @transform_11, window_bounds = array<i64: 32, 32>}, {pipeline_mode = #tpu.pipeline_mode<synchronous>, transform_indices = @transform_12, window_bounds = array<i64: 1, 32>}, {pipeline_mode = #tpu.pipeline_mode<synchronous>, transform_indices = @transform_13, window_bounds = array<i64: 32, 32>}, {pipeline_mode = #tpu.pipeline_mode<synchronous>, transform_indices = @transform_14, window_bounds = array<i64: 1, 32>}, {transform_indices = @transform_15, window_bounds = array<i64: 8, 32>}]} {
    %c0 = arith.constant 0 : index
    %c0_0 = arith.constant 0 : index
    %0 = vector.load %arg2[%c0, %c0_0] : memref<32x32xf32, #tpu.memory_space<vmem>>, vector<32x32xf32>
    %c0_1 = arith.constant 0 : index
    %c0_2 = arith.constant 0 : index
    %1 = vector.load %arg6[%c0_1, %c0_2] : memref<32x32xf32, #tpu.memory_space<vmem>>, vector<32x32xf32>
    %cst = arith.constant dense<0.000000e+00> : vector<32x32xf32>
    %2 = tpu.matmul %0, %1, %cst {dimension_numbers = #tpu.dot_dimension_numbers<[1], [0], [0], [1], [0, 0, 1, 1], [], []>} : vector<32x32xf32>, vector<32x32xf32>, vector<32x32xf32> -> vector<32x32xf32>
    %c0_3 = arith.constant 0 : index
    %c0_4 = arith.constant 0 : index
    %3 = vector.load %arg3[%c0_3, %c0_4] : memref<32x32xf32, #tpu.memory_space<vmem>>, vector<32x32xf32>
    %c0_5 = arith.constant 0 : index
    %c0_6 = arith.constant 0 : index
    %4 = vector.load %arg7[%c0_5, %c0_6] : memref<32x32xf32, #tpu.memory_space<vmem>>, vector<32x32xf32>
    %cst_7 = arith.constant dense<0.000000e+00> : vector<32x32xf32>
    %5 = tpu.matmul %3, %4, %cst_7 {dimension_numbers = #tpu.dot_dimension_numbers<[1], [0], [0], [1], [0, 0, 1, 1], [], []>} : vector<32x32xf32>, vector<32x32xf32>, vector<32x32xf32> -> vector<32x32xf32>
    %6 = arith.addf %2, %5 : vector<32x32xf32>
    %c0_8 = arith.constant 0 : index
    %c0_9 = arith.constant 0 : index
    %7 = vector.load %arg4[%c0_8, %c0_9] : memref<32x1xf32, #tpu.memory_space<vmem>>, vector<32x1xf32>
    %c0_10 = arith.constant 0 : index
    %c0_11 = arith.constant 0 : index
    %8 = vector.load %arg8[%c0_10, %c0_11] : memref<1x32xf32, #tpu.memory_space<vmem>>, vector<1x32xf32>
    %9 = vector.broadcast %7 : vector<32x1xf32> to vector<32x32xf32>
    %10 = vector.broadcast %8 : vector<1x32xf32> to vector<32x32xf32>
    %11 = arith.mulf %9, %10 : vector<32x32xf32>
    %12 = arith.addf %6, %11 : vector<32x32xf32>
    %c0_12 = arith.constant 0 : index
    %c0_13 = arith.constant 0 : index
    %13 = vector.load %arg9[%c0_12, %c0_13] : memref<1x32xf32, #tpu.memory_space<vmem>>, vector<1x32xf32>
    %14 = vector.broadcast %13 : vector<1x32xf32> to vector<32x32xf32>
    %15 = arith.addf %12, %14 : vector<32x32xf32>
    %16 = arith.negf %15 : vector<32x32xf32>
    %17 = math.exp %16 : vector<32x32xf32>
    %cst_14 = arith.constant 1.000000e+00 : f32
    %18 = vector.broadcast %cst_14 : f32 to vector<32x32xf32>
    %19 = arith.addf %18, %17 : vector<32x32xf32>
    %20 = arith.divf %18, %19 : vector<32x32xf32>
    %21 = arith.mulf %15, %20 : vector<32x32xf32>
    %c0_15 = arith.constant 0 : index
    %c0_16 = arith.constant 0 : index
    %22 = vector.load %arg10[%c0_15, %c0_16] : memref<32x32xf32, #tpu.memory_space<vmem>>, vector<32x32xf32>
    %cst_17 = arith.constant dense<0.000000e+00> : vector<32x32xf32>
    %23 = tpu.matmul %21, %22, %cst_17 {dimension_numbers = #tpu.dot_dimension_numbers<[1], [0], [0], [1], [0, 0, 1, 1], [], []>} : vector<32x32xf32>, vector<32x32xf32>, vector<32x32xf32> -> vector<32x32xf32>
    %c0_18 = arith.constant 0 : index
    %c0_19 = arith.constant 0 : index
    %24 = vector.load %arg11[%c0_18, %c0_19] : memref<1x32xf32, #tpu.memory_space<vmem>>, vector<1x32xf32>
    %25 = vector.broadcast %24 : vector<1x32xf32> to vector<32x32xf32>
    %26 = arith.addf %23, %25 : vector<32x32xf32>
    %27 = arith.negf %26 : vector<32x32xf32>
    %28 = math.exp %27 : vector<32x32xf32>
    %cst_20 = arith.constant 1.000000e+00 : f32
    %29 = vector.broadcast %cst_20 : f32 to vector<32x32xf32>
    %30 = arith.addf %29, %28 : vector<32x32xf32>
    %31 = arith.divf %29, %30 : vector<32x32xf32>
    %32 = arith.mulf %26, %31 : vector<32x32xf32>
    %c0_21 = arith.constant 0 : index
    %c0_22 = arith.constant 0 : index
    %33 = vector.load %arg5[%c0_21, %c0_22] : memref<8x32xf32, #tpu.memory_space<vmem>>, vector<8x32xf32>
    %cst_23 = arith.constant dense<0.000000e+00> : vector<8x32xf32>
    %34 = tpu.matmul %33, %32, %cst_23 {dimension_numbers = #tpu.dot_dimension_numbers<[1], [0], [0], [1], [0, 0, 1, 1], [], []>} : vector<8x32xf32>, vector<32x32xf32>, vector<8x32xf32> -> vector<8x32xf32>
    %c0_24 = arith.constant 0 : index
    %c0_25 = arith.constant 0 : index
    %35 = vector.load %arg12[%c0_24, %c0_25] : memref<32x32xf32, #tpu.memory_space<vmem>>, vector<32x32xf32>
    %cst_26 = arith.constant dense<0.000000e+00> : vector<8x32xf32>
    %36 = tpu.matmul %34, %35, %cst_26 {dimension_numbers = #tpu.dot_dimension_numbers<[1], [0], [0], [1], [0, 0, 1, 1], [], []>} : vector<8x32xf32>, vector<32x32xf32>, vector<8x32xf32> -> vector<8x32xf32>
    %c0_27 = arith.constant 0 : index
    %c0_28 = arith.constant 0 : index
    %37 = vector.load %arg13[%c0_27, %c0_28] : memref<1x32xf32, #tpu.memory_space<vmem>>, vector<1x32xf32>
    %38 = vector.broadcast %37 : vector<1x32xf32> to vector<8x32xf32>
    %39 = arith.addf %36, %38 : vector<8x32xf32>
    %cst_29 = arith.constant 0.000000e+00 : f32
    %40 = vector.broadcast %cst_29 : f32 to vector<8x32xf32>
    %41 = arith.maximumf %39, %40 : vector<8x32xf32>
    %c0_30 = arith.constant 0 : index
    %c0_31 = arith.constant 0 : index
    %42 = vector.load %arg14[%c0_30, %c0_31] : memref<32x32xf32, #tpu.memory_space<vmem>>, vector<32x32xf32>
    %cst_32 = arith.constant dense<0.000000e+00> : vector<8x32xf32>
    %43 = tpu.matmul %41, %42, %cst_32 {dimension_numbers = #tpu.dot_dimension_numbers<[1], [0], [0], [1], [0, 0, 1, 1], [], []>} : vector<8x32xf32>, vector<32x32xf32>, vector<8x32xf32> -> vector<8x32xf32>
    %c0_33 = arith.constant 0 : index
    %c0_34 = arith.constant 0 : index
    %44 = vector.load %arg15[%c0_33, %c0_34] : memref<1x32xf32, #tpu.memory_space<vmem>>, vector<1x32xf32>
    %45 = vector.broadcast %44 : vector<1x32xf32> to vector<8x32xf32>
    %46 = arith.addf %43, %45 : vector<8x32xf32>
    %47 = arith.negf %46 : vector<8x32xf32>
    %48 = math.exp %47 : vector<8x32xf32>
    %cst_35 = arith.constant 1.000000e+00 : f32
    %49 = vector.broadcast %cst_35 : f32 to vector<8x32xf32>
    %50 = arith.addf %49, %48 : vector<8x32xf32>
    %51 = arith.divf %49, %50 : vector<8x32xf32>
    %c0_36 = arith.constant 0 : index
    %c0_37 = arith.constant 0 : index
    %52 = vector.load %arg1[%c0_36, %c0_37] : memref<8x32xf32, #tpu.memory_space<vmem>>, vector<8x32xf32>
    %53 = arith.mulf %51, %34 : vector<8x32xf32>
    %54 = arith.addf %52, %53 : vector<8x32xf32>
    %c0_38 = arith.constant 0 : index
    %c0_39 = arith.constant 0 : index
    %55 = vector.load %arg16[%c0_38, %c0_39] : memref<8x32xf32, #tpu.memory_space<vmem>>, vector<8x32xf32>
    tpu.vector_store %arg16[%c0_38, %c0_39], %54 {strides = array<i32>} : memref<8x32xf32, #tpu.memory_space<vmem>>, vector<8x32xf32>,
    return
  }
  func.func @transform_0(%arg0: i32) -> (i32, i32) {
    %c0_i32 = arith.constant 0 : i32
    %c0_i32_0 = arith.constant 0 : i32
    return %arg0, %c0_i32 : i32, i32
  }
  func.func @transform_1(%arg0: i32) -> (i32, i32) {
    %c0_i32 = arith.constant 0 : i32
    %c0_i32_0 = arith.constant 0 : i32
    return %arg0, %c0_i32 : i32, i32
  }
  func.func @transform_2(%arg0: i32) -> (i32, i32) {
    %c0_i32 = arith.constant 0 : i32
    %c0_i32_0 = arith.constant 0 : i32
    return %arg0, %c0_i32 : i32, i32
  }
  func.func @transform_3(%arg0: i32) -> (i32, i32) {
    %c0_i32 = arith.constant 0 : i32
    %c0_i32_0 = arith.constant 0 : i32
    return %arg0, %c0_i32 : i32, i32
  }
  func.func @transform_4(%arg0: i32) -> (i32, i32) {
    %c0_i32 = arith.constant 0 : i32
    %c0_i32_0 = arith.constant 0 : i32
    %c0_i32_1 = arith.constant 0 : i32
    return %c0_i32, %c0_i32_0 : i32, i32
  }
  func.func @transform_5(%arg0: i32) -> (i32, i32) {
    %c0_i32 = arith.constant 0 : i32
    %c0_i32_0 = arith.constant 0 : i32
    %c0_i32_1 = arith.constant 0 : i32
    return %c0_i32, %c0_i32_0 : i32, i32
  }
  func.func @transform_6(%arg0: i32) -> (i32, i32) {
    %c0_i32 = arith.constant 0 : i32
    %c0_i32_0 = arith.constant 0 : i32
    %c0_i32_1 = arith.constant 0 : i32
    return %c0_i32, %c0_i32_0 : i32, i32
  }
  func.func @transform_7(%arg0: i32) -> (i32, i32) {
    %c0_i32 = arith.constant 0 : i32
    %c0_i32_0 = arith.constant 0 : i32
    %c0_i32_1 = arith.constant 0 : i32
    return %c0_i32, %c0_i32_0 : i32, i32
  }
  func.func @transform_8(%arg0: i32) -> (i32, i32) {
    %c0_i32 = arith.constant 0 : i32
    %c0_i32_0 = arith.constant 0 : i32
    %c0_i32_1 = arith.constant 0 : i32
    return %c0_i32, %c0_i32_0 : i32, i32
  }
  func.func @transform_9(%arg0: i32) -> (i32, i32) {
    %c0_i32 = arith.constant 0 : i32
    %c0_i32_0 = arith.constant 0 : i32
    %c0_i32_1 = arith.constant 0 : i32
    return %c0_i32, %c0_i32_0 : i32, i32
  }
  func.func @transform_10(%arg0: i32) -> (i32, i32) {
    %c0_i32 = arith.constant 0 : i32
    %c0_i32_0 = arith.constant 0 : i32
    %c0_i32_1 = arith.constant 0 : i32
    return %c0_i32, %c0_i32_0 : i32, i32
  }
  func.func @transform_11(%arg0: i32) -> (i32, i32) {
    %c0_i32 = arith.constant 0 : i32
    %c0_i32_0 = arith.constant 0 : i32
    %c0_i32_1 = arith.constant 0 : i32
    return %c0_i32, %c0_i32_0 : i32, i32
  }
  func.func @transform_12(%arg0: i32) -> (i32, i32) {
    %c0_i32 = arith.constant 0 : i32
    %c0_i32_0 = arith.constant 0 : i32
    %c0_i32_1 = arith.constant 0 : i32
    return %c0_i32, %c0_i32_0 : i32, i32
  }
  func.func @transform_13(%arg0: i32) -> (i32, i32) {
    %c0_i32 = arith.constant 0 : i32
    %c0_i32_0 = arith.constant 0 : i32
    %c0_i32_1 = arith.constant 0 : i32
    return %c0_i32, %c0_i32_0 : i32, i32
  }
  func.func @transform_14(%arg0: i32) -> (i32, i32) {
    %c0_i32 = arith.constant 0 : i32
    %c0_i32_0 = arith.constant 0 : i32
    %c0_i32_1 = arith.constant 0 : i32
    return %c0_i32, %c0_i32_0 : i32, i32
  }
  func.func @transform_15(%arg0: i32) -> (i32, i32) {
    %c0_i32 = arith.constant 0 : i32
    %c0_i32_0 = arith.constant 0 : i32
    return %arg0, %c0_i32 : i32, i32
  }
}

</mosaic_0001>

<bundles_post_ra>
// kernel: tpu_custom_call.1
= control target key start
LH: loop header
LB: loop body
LE: loop exit
PB: predicated region body
PF: predicated region fallthrough
CT: control target
= control target key end

     0   :  { %s1652_s0 = inlined_call_operand.vmem [shape: f32[16,32], index: 0, kind: input, shape index: {}]   ;;  %s1653_s1 = inlined_call_operand.vmem [shape: f32[64,32], index: 1, kind: input, shape index: {}]   ;;  %s1654_s2 = inlined_call_operand.vmem [shape: f32[64,32], index: 2, kind: input, shape index: {}]   ;;  %s1655_s3 = inlined_call_operand.vmem [shape: f32[64,1], index: 3, kind: input, shape index: {}]   ;;  %s1656_s4 = inlined_call_operand.vmem [shape: f32[8,32], index: 4, kind: input, shape index: {}]   ;;  %s1657_s5 = inlined_call_operand.vmem [shape: f32[32,32], index: 5, kind: input, shape index: {}]   ;;  %s1658_s6 = inlined_call_operand.vmem [shape: f32[32,32], index: 6, kind: input, shape index: {}]   ;;  %s1659_s7 = inlined_call_operand.vmem [shape: f32[1,32], index: 7, kind: input, shape index: {}]   ;;  %s1660_s8 = inlined_call_operand.vmem [shape: f32[1,32], index: 8, kind: input, shape index: {}]   ;;  %s1661_s9 = inlined_call_operand.vmem [shape: f32[32,32], index: 9, kind: input, shape index: {}]   ;;  %s1662_s10 = inlined_call_operand.vmem [shape: f32[1,32], index: 10, kind: input, shape index: {}]   ;;  %s1663_s11 = inlined_call_operand.vmem [shape: f32[32,32], index: 11, kind: input, shape index: {}]   ;;  %s1664_s12 = inlined_call_operand.vmem [shape: f32[1,32], index: 12, kind: input, shape index: {}]   ;;  %s1665_s13 = inlined_call_operand.vmem [shape: f32[32,32], index: 13, kind: input, shape index: {}]   ;;  %s1666_s14 = inlined_call_operand.vmem [shape: f32[1,32], index: 14, kind: input, shape index: {}]   ;;  %s1667_s15 = inlined_call_operand.hbm [shape: f32[16,32], index: 15, kind: output, shape index: {}]  }
   0x1   :  { %1674 = sst [smem:[#allocation11_spill]] %s1652_s0 }
   0x2   :  { %20 = vsyncpa [#allocation3], 0 }
   0x3   :  { %22 = vsyncpa [#allocation3 + $0x1], 0  ;;  %s1397_s18 = smov 0   ;;  %s1399_s19 = smov 0  }
   0x4   :  { %s1401_s20 = smov 0   ;;  %s1403_s21 = smov 0  }
   0x5 LB: > { %1675 = sst [smem:[#allocation5_spill]] %s1302_s18  ;;  %s1418_s22 = sadd.s32 4294967295, %s1314_s21   ;;  %s1314_s21 = sphi %s1403_s21, %s1691_s21   ;;  %s1310_s20 = sphi %s1401_s20, %s1693_s20   ;;  %s1306_s19 = sphi %s1399_s19, %s1695_s19   ;;  %s1302_s18 = sphi %s1397_s18, %s1694_s18  }
   0x6   : > { %1676 = sst [smem:[#allocation6_spill]] %s1310_s20  ;;  %s1129_s23 = sadd.s32 4294967294, %s1314_s21  }
   0x7   : > { %1677 = sst [smem:[#allocation7_spill]] %s1314_s21  ;;  %s1422_s24 = sadd.s32 1, %s1314_s21  }
   0x8   : > { %1678 = sst [smem:[#allocation8_spill]] %s1422_s24  ;;  %s370_s25 = sadd.s32 1, %s1310_s20 }
   0x9   : > { %s367_s26 = ssub.s32 %s1314_s21, %s1422_s24  ;;  %p380_p0 = scmp.ne.s32.totalorder %s1310_s20, %s1306_s19 }
   0xa   : > { %p368_p1 = scmp.eq.s32.totalorder %s367_s26, 0  ;;  %p381_p2 = scmp.eq.s32.totalorder %s1418_s22, 1 }
   0xb   : > { %p386_p3 = scmp.ne.s32.totalorder %s1306_s19, %s1302_s18  ;;  %p387_p4 = scmp.eq.s32.totalorder %s1129_s23, 1 }
   0xc   : > { %s1433_s27 = scalar_select %p368_p1, %s1310_s20, %s370_s25  }
   0xd   : > { %p1435_p5 = por %p381_p2, %p380_p0  ;;  %p1439_p6 = por %p387_p4, %p386_p3 }
   0xe   : > { %1679 = sst [smem:[#allocation9_spill]] %s1433_s27  ;;  %p1132_p7 = scmp.ge.s32.totalorder %s1314_s21, 1 }
   0xf   : > { %s1681_s29 = scalar_select %p1439_p6, 1, 0 }
  0x10   : > { %p472_p8 = scmp.lt.s32.totalorder %s1314_s21, 3 }
  0x11   : > { %1682 = sst [smem:[#allocation10_spill]] %s1681_s29 }
  0x12   : > { %p473_p9 = pnand %p1132_p7, %p472_p8 }
  0x13   : > { %s1135_s27 = sshll.u32 (!%p473_p9), %s1418_s22, 2  ;;  %p534_p11 = scmp.lt.s32.totalorder (!%p473_p9), %s1418_s22, 1 }
  0x14   : > { %476 = sbr.rel (%p473_p9) target bundleno = 828 (0x33c), region = 80  ;;  %p539_p10 = scmp.lt.s32.totalorder (!%p473_p9), %s1135_s27, 7 }
  0x15   : > { %s1166_s25 = sshll.u32 (!%p473_p9), %s1418_s22, 3  ;;  %s1687_s0 = sld [smem:[#allocation11_spill]] (!%p473_p9) }
  0x16   : > { %s1029_s23 = scalar_lea.hbm (!%p473_p9), %s1667_s15, %s1166_s25 }
  0x19   : > { %v571_v0 = vld [vmem:[%s1658_s6 + $0x18] sm:$0xff]  ;;  %v570_v2 = vld [vmem:[%s1658_s6 + $0x10] sm:$0xff]  ;;  %v569_v4 = vld [vmem:[%s1658_s6 + $0x8] sm:$0xff]  ;;  %v1316_v6 = vmov 0   ;;  %s1697_s27 = smov (!%p539_p10, %s1135_s27), 7  ;;  %vm572_vm0 = vcmask 261120  }
  0x1a   : > { %v563_v1 = vld [vmem:[%s1657_s5 + $0x18] sm:$0xff]  ;;  %597 = vmatpush.msra.mxu0 %v571_v0  ;;  %v562_v3 = vld [vmem:[%s1657_s5 + $0x10] sm:$0xff]  ;;  %v561_v5 = vld [vmem:[%s1657_s5 + $0x8] sm:$0xff]  ;;  %1209 = vset.pattern.permute.xlu0 %v1316_v6  ;;  %s1136_s29 = sshll.u32 %s1697_s27, 3  ;;  %s531_s27 = sand.u32 1, %s1306_s19  }
  0x1b   : > { %638 = vmatpush.msra.mxu1 %v563_v1  ;;  %1210 = vset.pattern.permute.xlu1 %v1316_v6  ;;  %v568_v7 = vld [vmem:[%s1658_s6] sm:$0xff]  ;;  %s548_s26 = scalar_lea.vmem %s1654_s2, %s1136_s29  ;;  %s542_s21 = scalar_lea.vmem %s1653_s1, %s1136_s29  ;;  %v782_v23 = vld [vmem:[%s1661_s9 + $0x18] sm:$0xff]  ;;  %v781_v25 = vld [vmem:[%s1661_s9 + $0x10] sm:$0xff] }
  0x1c   : > { %598 = vmatpush.msra.mxu0 %v570_v2  ;;  %v560_v8 = vld [vmem:[%s1657_s5] sm:$0xff]  ;;  %s554_s20 = scalar_lea.vmem %s1655_s3, %s1136_s29  ;;  %v565_v13 = vld [vmem:[%s548_s26 + $0x8] sm:$0xff]  ;;  %v566_v17 = vld [vmem:[%s548_s26 + $0x10] sm:$0xff]  ;;  %811 = vmatpush.msra.mxu2 %v782_v23  ;;  %s1133_s29 = sshll.u32 %s531_s27, 3 }
  0x1d   : > { %639 = vmatpush.msra.mxu1 %v562_v3  ;;  %v564_v9 = vld [vmem:[%s548_s26] sm:$0xff]  ;;  %v657_v12 = vld [vmem:[%s554_s20 + $0x10] sm:$0xff]  ;;  %v557_v14 = vld [vmem:[%s542_s21 + $0x8] sm:$0xff]  ;;  %s535_s24 = scalar_select %p534_p11, %s1418_s22, 1 }
  0x1e   : > { %599 = vmatpush.msra.mxu0 %v569_v4  ;;  %v556_v10 = vld [vmem:[%s542_s21] sm:$0xff]  ;;  %672 = vperm.xlu1 %1210, %v657_v12   ;;  %v656_v15 = vld [vmem:[%s554_s20 + $0x8] sm:$0xff]  ;;  %v658_v16 = vld [vmem:[%s554_s20 + $0x18] sm:$0xff]  ;;  %s533_s22 = scalar_lea.vmem [#allocation2], %s1133_s29  ;;  %s1272_s29 = scalar_lea.hbm %s1667_s15, 16 }
  0x1f   : > { %640 = vmatpush.msra.mxu1 %v561_v5  ;;  %v655_v11 = vld [vmem:[%s554_s20] sm:$0xff]  ;;  %v558_v18 = vld [vmem:[%s542_s21 + $0x10] sm:$0xff]  ;;  %v567_v19 = vld [vmem:[%s548_s26 + $0x18] sm:$0xff]  ;;  %812 = vmatpush.msra.mxu2 %v781_v25  ;;  %s1134_s18 = sshll.u32 %s535_s24, 3  ;;  %s1031_s20 = sshll.u32 %s533_s22, 4  ;;  %s1032_s20 = int_to_ptr.vmem [resolvable:$true] %s1031_s20 }
  0x20   : > { %600 = vmatpush.msra.mxu0 %v568_v7  ;;  %662 = vperm.xlu0 %1209, %v655_v11   ;;  %v559_v20 = vld [vmem:[%s542_s21 + $0x18] sm:$0xff]  ;;  %v1211_v21 = vld [vmem:[%s1659_s7] ss:$0 sm:$0xff]  ;;  %v780_v30 = vld [vmem:[%s1661_s9 + $0x8] sm:$0xff]  ;;  %s537_s26 = scalar_lea.vmem %s1687_s0, %s1134_s18  ;;  %s1033_s24 = sshll.u32 %s1029_s23, 4  ;;  %s1034_s24 = int_to_ptr.hbm [resolvable:$true] %s1033_s24 }
  0x21   : > { %641 = vmatpush.msra.mxu1 %v560_v8  ;;  %1141 = vmatmul.msk.f32.vlgmr.msra.gmra.mxu0 %vm572_vm0, %v564_v9  ;;  %v1212_v29 = vld [vmem:[%s1660_s8] ss:$0 sm:$0xff]  ;;  %s1019_s18 = scalar_lea.sflag [#allocation3], %s531_s27  ;;  %s1266_s30 = sshra.s32 %s1034_s24, 4  ;;  %s1267_s30 = int_to_ptr.hbm [resolvable:$true] %s1266_s30 }
  0x22   : > { %1145 = vmatmul.msk.f32.vlgmr.msra.gmra.mxu1 %vm572_vm0, %v556_v10  ;;  %813 = vmatpush.msra.mxu2 %v780_v30  ;;  %v779_v32 = vld [vmem:[%s1661_s9] sm:$0xff]  ;;  %s1268_s25 = scalar_lea.hbm %s1267_s30, 8  ;;  %p1273_p1 = scmp.lt.s32.totalorder %s1267_s30, %s1667_s15 }
  0x23   : > { %p1269_p12 = scmp.ne.s32.totalorder %s1267_s30, %s1268_s25  ;;  %p1274_p2 = scmp.lt.s32.totalorder %s1272_s29, %s1268_s25 }
  0x24   : > { %814 = vmatpush.msra.mxu2 %v779_v32 }
  0x25   : > { %p1270_p13 = pnand %p1269_p12, %p1435_p5  ;;  %p1275_p3 = por %p1274_p2, %p1273_p1 }
  0x26   : > { %677 = vperm.xlu1 %1210, %v658_v16  }
  0x27   : > { %p1271_p0 = pneg %p1270_p13 }
  0x28   : > { %667 = vperm.xlu0 %1209, %v656_v15  }
  0x29   : > { %1142 = vmatmul.msk.f32.gmra.mxu0 %vm572_vm0, %v565_v13  ;;  %p1276_p4 = pnand %p1275_p3, %p1271_p0 }
  0x2a   : > { %1146 = vmatmul.msk.f32.gmra.mxu1 %vm572_vm0, %v557_v14 }
  0x31   : > { %1143 = vmatmul.msk.f32.gmra.mxu0 %vm572_vm0, %v566_v17 }
  0x32   : > { %1147 = vmatmul.msk.f32.gmra.mxu1 %vm572_vm0, %v558_v18 }
  0x39   : > { %1144 = vmatmul.msk.f32.gmra.mxu0 %vm572_vm0, %v567_v19 }
  0x3a   : > { %1148 = vmatmul.msk.f32.gmra.mxu1 %vm572_vm0, %v559_v20 }
  0x90   : > { %v673_v41 = vpop.permute.xlu1 %672 }
  0x91   : > { %v685_v44 = vmul.f32 %v1211_v21, %v673_v41 }
  0x92   : > { %v663_v22 = vpop.permute.xlu0 %662 }
  0x93   : > { %v683_v24 = vmul.f32 %v1211_v21, %v663_v22 }
  0x98   : > { %v678_v52 = vpop.permute.xlu1 %677 }
  0x99   : > { %v686_v59 = vmul.f32 %v1211_v21, %v678_v52 }
  0x9a   : > { %v668_v34 = vpop.permute.xlu0 %667 }
  0x9b   : > { %v684_v38 = vmul.f32 %v1211_v21, %v668_v34 }
  0x9e   : > { %v602_v26 = vpop.f32.mrf.mxu0 }
  0x9f   : > { %v643_v27 = vpop.f32.mrf.mxu1 }
  0xa0   : > { %v644_v28 = vadd.f32 %v643_v27, %v602_v26 }
  0xa2   : > { %v687_v31 = vadd.f32 %v683_v24, %v644_v28 }
  0xa4   : > { %v695_v33 = vadd.f32 %v1212_v29, %v687_v31 }
  0xa6   : > { %v1149_v35 = vmul.f32 -1.442695, %v695_v33  ;;  %v605_v36 = vpop.f32.mrf.mxu0 }
  0xa7   : > { %v646_v37 = vpop.f32.mrf.mxu1 }
  0xa8   : > { %1216 = vpow2.f32 %v1149_v35  ;;  %v647_v39 = vadd.f32 %v646_v37, %v605_v36 }
  0xaa   : > { %v688_v40 = vadd.f32 %v684_v38, %v647_v39 }
  0xac   : > { %v1505_v42 = vadd.f32 %v1212_v29, %v688_v40 }
  0xae   : > { %v1217_v43 = vpop.eup %1216  ;;  %v1150_v45 = vmul.f32 -1.442695, %v1505_v42  ;;  %v608_v47 = vpop.f32.mrf.mxu0 }
  0xaf   : > { %v711_v46 = vadd.f32 1.0, %v1217_v43  ;;  %v649_v48 = vpop.f32.mrf.mxu1 }
  0xb0   : > { %1218 = vpow2.f32 %v1150_v45  ;;  %v650_v49 = vadd.f32 %v649_v48, %v608_v47  ;;  %v1213_v48 = vld [vmem:[%s1662_s10] ss:$0 sm:$0xff] }
  0xb1   : > { %1220 = vrcp.f32 %v711_v46  ;;  %v726_v0 = vand.u32 2147483648, %v711_v46  ;;  %v724_v3 = vand.u32 2147483647, %v711_v46  ;;  %vm720_vm2 = vweird.f32 %v711_v46 }
  0xb2   : > { %v689_v50 = vadd.f32 %v685_v44, %v650_v49 }
  0xb3   : > { %v727_v9 = vor.u32 1.1754944e-38, %v726_v0  ;;  %vm725_vm4 = vcmp.eq.f32.partialorder %v724_v3, 8.507059e+37 }
  0xb4   : > { %v1508_v51 = vadd.f32 %v1212_v29, %v689_v50 }
  0xb6   : > { %v1219_v53 = vpop.eup %1218  ;;  %v1151_v54 = vmul.f32 -1.442695, %v1508_v51  ;;  %v611_v57 = vpop.f32.mrf.mxu0 }
  0xb7   : > { %v1221_v55 = vpop.eup %1220  ;;  %v712_v56 = vadd.f32 1.0, %v1219_v53  ;;  %v652_v58 = vpop.f32.mrf.mxu1 }
  0xb8   : > { %1222 = vpow2.f32 %v1151_v54  ;;  %v653_v60 = vadd.f32 %v652_v58, %v611_v57  ;;  %v716_v61 = vmul.f32 %v1221_v55, %v711_v46  ;;  %vm721_vm1 = vweird.f32 %v1221_v55 }
  0xb9   : > { %1224 = vrcp.f32 %v712_v56  ;;  %vm722_vm3 = vmor %vm720_vm2, %vm721_vm1  ;;  %v741_v15 = vand.u32 2147483648, %v712_v56  ;;  %v739_v17 = vand.u32 2147483647, %v712_v56  ;;  %vm735_vm6 = vweird.f32 %v712_v56 }
  0xba   : > { %v690_v62 = vadd.f32 %v686_v59, %v653_v60  ;;  %v717_v63 = vsub.f32 1.0, %v716_v61 }
  0xbb   : > { %v742_v22 = vor.u32 1.1754944e-38, %v741_v15  ;;  %vm740_vm8 = vcmp.eq.f32.partialorder %v739_v17, 8.507059e+37 }
  0xbc   : > { %v1511_v1 = vadd.f32 %v1212_v29, %v690_v62  ;;  %v718_v2 = vmul.f32 %v1221_v55, %v717_v63 }
  0xbe   : > { %v1223_v4 = vpop.eup %1222  ;;  %v1152_v5 = vmul.f32 -1.442695, %v1511_v1  ;;  %v719_v6 = vadd.f32 %v1221_v55, %v718_v2 }
  0xbf   : > { %v1225_v7 = vpop.eup %1224  ;;  %v713_v8 = vadd.f32 1.0, %v1223_v4 }
  0xc0   : > { %1226 = vpow2.f32 %v1152_v5  ;;  %v723_v10 = vsel %vm722_vm3, %v1221_v55, %v719_v6  ;;  %v731_v11 = vmul.f32 %v1225_v7, %v712_v56  ;;  %vm736_vm5 = vweird.f32 %v1225_v7 }
  0xc1   : > { %1228 = vrcp.f32 %v713_v8  ;;  %v728_v12 = vsel %vm725_vm4, %v727_v9, %v723_v10  ;;  %vm737_vm7 = vmor %vm735_vm6, %vm736_vm5  ;;  %v756_v28 = vand.u32 2147483648, %v713_v8  ;;  %v754_v30 = vand.u32 2147483647, %v713_v8 }
  0xc2   : > { %v775_v13 = vmul.f32 %v728_v12, %v695_v33  ;;  %v732_v14 = vsub.f32 1.0, %v731_v11  ;;  %vm750_vm10 = vweird.f32 %v713_v8 }
  0xc3   : > { %v757_v33 = vor.u32 1.1754944e-38, %v756_v28  ;;  %vm755_vm12 = vcmp.eq.f32.partialorder %v754_v30, 8.507059e+37 }
  0xc4   : > { %1153 = vmatmul.msk.f32.vlgmr.msra.gmra.mxu2 %vm572_vm0, %v775_v13  ;;  %v733_v16 = vmul.f32 %v1225_v7, %v732_v14 }
  0xc6   : > { %v1227_v18 = vpop.eup %1226  ;;  %v734_v19 = vadd.f32 %v1225_v7, %v733_v16 }
  0xc7   : > { %v1229_v20 = vpop.eup %1228  ;;  %v714_v21 = vadd.f32 1.0, %v1227_v18 }
  0xc8   : > { %v738_v23 = vsel %vm737_vm7, %v1225_v7, %v734_v19  ;;  %v746_v24 = vmul.f32 %v1229_v20, %v713_v8  ;;  %vm751_vm9 = vweird.f32 %v1229_v20 }
  0xc9   : > { %1230 = vrcp.f32 %v714_v21  ;;  %v743_v25 = vsel %vm740_vm8, %v742_v22, %v738_v23  ;;  %vm752_vm11 = vmor %vm750_vm10, %vm751_vm9  ;;  %v771_v39 = vand.u32 2147483648, %v714_v21  ;;  %v769_v41 = vand.u32 2147483647, %v714_v21 }
  0xca   : > { %v776_v26 = vmul.f32 %v743_v25, %v1505_v42  ;;  %v747_v27 = vsub.f32 1.0, %v746_v24  ;;  %vm765_vm14 = vweird.f32 %v714_v21 }
  0xcb   : > { %v772_v43 = vor.u32 1.1754944e-38, %v771_v39  ;;  %vm770_vm1 = vcmp.eq.f32.partialorder %v769_v41, 8.507059e+37 }
  0xcc   : > { %1154 = vmatmul.msk.f32.gmra.mxu2 %vm572_vm0, %v776_v26  ;;  %v748_v29 = vmul.f32 %v1229_v20, %v747_v27 }
  0xce   : > { %v749_v31 = vadd.f32 %v1229_v20, %v748_v29 }
  0xcf   : > { %v1231_v32 = vpop.eup %1230 }
  0xd0   : > { %v753_v34 = vsel %vm752_vm11, %v1229_v20, %v749_v31  ;;  %v761_v35 = vmul.f32 %v1231_v32, %v714_v21  ;;  %vm766_vm13 = vweird.f32 %v1231_v32 }
  0xd1   : > { %v758_v36 = vsel %vm755_vm12, %v757_v33, %v753_v34  ;;  %vm767_vm15 = vmor %vm765_vm14, %vm766_vm13 }
  0xd2   : > { %v777_v37 = vmul.f32 %v758_v36, %v1508_v51  ;;  %v762_v38 = vsub.f32 1.0, %v761_v35 }
  0xd4   : > { %1155 = vmatmul.msk.f32.gmra.mxu2 %vm572_vm0, %v777_v37  ;;  %v763_v40 = vmul.f32 %v1231_v32, %v762_v38 }
  0xd6   : > { %v764_v42 = vadd.f32 %v1231_v32, %v763_v40 }
  0xd8   : > { %v768_v44 = vsel %vm767_vm15, %v1231_v32, %v764_v42 }
  0xd9   : > { %v773_v45 = vsel %vm770_vm1, %v772_v43, %v768_v44 }
  0xda   : > { %v778_v46 = vmul.f32 %v773_v45, %v1511_v1 }
  0xdc   : > { %1156 = vmatmul.msk.f32.gmra.mxu2 %vm572_vm0, %v778_v46 }
 0x147   : > { %v816_v47 = vpop.f32.mrf.mxu2 }
 0x148   : > { %v1524_v49 = vadd.f32 %v1213_v48, %v816_v47 }
 0x14a   : > { %v1157_v52 = vmul.f32 -1.442695, %v1524_v49 }
 0x14c   : > { %1232 = vpow2.f32 %v1157_v52  ;;  %v908_v52 = vld [vmem:[%s1656_s4] sm:$0xff] }
 0x14f   : > { %v819_v50 = vpop.f32.mrf.mxu2 }
 0x150   : > { %v1526_v51 = vadd.f32 %v1213_v48, %v819_v50 }
 0x152   : > { %v1158_v53 = vmul.f32 -1.442695, %v1526_v51  ;;  %v1233_v57 = vpop.eup %1232 }
 0x153   : > { %v1533_v59 = vadd.f32 1.0, %v1233_v57 }
 0x154   : > { %1234 = vpow2.f32 %v1158_v53  ;;  %v935_v53 = vld [vmem:[%s1663_s11 + $0x18] sm:$0xff] }
 0x155   : > { %vm849_vm2 = vweird.f32 %v1533_v59  ;;  %v853_v35 = vand.u32 2147483647, %v1533_v59  ;;  %v855_v36 = vand.u32 2147483648, %v1533_v59 }
 0x157   : > { %v822_v54 = vpop.f32.mrf.mxu2  ;;  %v856_v45 = vor.u32 1.1754944e-38, %v855_v36 }
 0x158   : > { %v1530_v55 = vadd.f32 %v1213_v48, %v822_v54  ;;  %v934_v54 = vld [vmem:[%s1663_s11 + $0x10] sm:$0xff] }
 0x15a   : > { %v1159_v56 = vmul.f32 -1.442695, %v1530_v55  ;;  %v1235_v58 = vpop.eup %1234 }
 0x15b   : > { %v1535_v60 = vadd.f32 1.0, %v1235_v58  ;;  %v965_v58 = vld [vmem:[%s1665_s13 + $0x8] sm:$0xff] }
 0x15c   : > { %1236 = vpow2.f32 %v1159_v56  ;;  %v966_v56 = vld [vmem:[%s1665_s13 + $0x10] sm:$0xff] }
 0x15d   : > { %1238 = vrcp.f32 %v1533_v59  ;;  %vm864_vm8 = vweird.f32 %v1535_v60  ;;  %v868_v27 = vand.u32 2147483647, %v1535_v60  ;;  %v870_v28 = vand.u32 2147483648, %v1535_v60 }
 0x15e   : > { %1240 = vrcp.f32 %v1535_v60 }
 0x15f   : > { %v825_v61 = vpop.f32.mrf.mxu2  ;;  %v871_v41 = vor.u32 1.1754944e-38, %v870_v28  ;;  %vm869_vm1 = vcmp.eq.f32.partialorder %v868_v27, 8.507059e+37 }
 0x160   : > { %v826_v62 = vadd.f32 %v1213_v48, %v825_v61 }
 0x162   : > { %v1237_v63 = vpop.eup %1236  ;;  %v1160_v0 = vmul.f32 -1.442695, %v826_v62 }
 0x163   : > { %v842_v1 = vadd.f32 1.0, %v1237_v63  ;;  %v1539_v2 = vpop.eup %1238 }
 0x164   : > { %1242 = vpow2.f32 %v1160_v0  ;;  %v1241_v3 = vpop.eup %1240  ;;  %v845_v9 = vmul.f32 %v1539_v2, %v1533_v59  ;;  %vm850_vm9 = vweird.f32 %v1539_v2  ;;  %v964_v59 = vld [vmem:[%s1665_s13] sm:$0xff] }
 0x165   : > { %1244 = vrcp.f32 %v842_v1  ;;  %v860_v8 = vmul.f32 %v1241_v3, %v1535_v60  ;;  %vm865_vm4 = vweird.f32 %v1241_v3  ;;  %vm879_vm5 = vweird.f32 %v842_v1  ;;  %vm851_vm15 = vmor %vm849_vm2, %vm850_vm9  ;;  %v1214_v60 = vld [vmem:[%s1664_s12] ss:$0 sm:$0xff] }
 0x166   : > { %v846_v12 = vsub.f32 1.0, %v845_v9  ;;  %v883_v21 = vand.u32 2147483647, %v842_v1  ;;  %v885_v22 = vand.u32 2147483648, %v842_v1  ;;  %vm1557_vm11 = vmor %vm864_vm8, %vm865_vm4  ;;  %v1215_v0 = vld [vmem:[%s1666_s14] ss:$0 sm:$0xff] }
 0x167   : > { %v861_v11 = vsub.f32 1.0, %v860_v8 }
 0x168   : > { %v847_v17 = vmul.f32 %v1539_v2, %v846_v12  ;;  %v886_v34 = vor.u32 1.1754944e-38, %v885_v22  ;;  %vm884_vm14 = vcmp.eq.f32.partialorder %v883_v21, 8.507059e+37 }
 0x169   : > { %v862_v16 = vmul.f32 %v1241_v3, %v861_v11 }
 0x16a   : > { %v1243_v4 = vpop.eup %1242  ;;  %v848_v32 = vadd.f32 %v1539_v2, %v847_v17 }
 0x16b   : > { %v1245_v5 = vpop.eup %1244  ;;  %v843_v6 = vadd.f32 1.0, %v1243_v4  ;;  %v863_v25 = vadd.f32 %v1241_v3, %v862_v16  ;;  %v1014_v16 = vld [vmem:[%s537_s26] sm:$0xff] }
 0x16c   : > { %v875_v7 = vmul.f32 %v1245_v5, %v842_v1  ;;  %vm880_vm3 = vweird.f32 %v1245_v5  ;;  %v852_v43 = vsel %vm851_vm15, %v1539_v2, %v848_v32 }
 0x16d   : > { %1246 = vrcp.f32 %v843_v6  ;;  %v900_v20 = vand.u32 2147483648, %v843_v6  ;;  %v898_v24 = vand.u32 2147483647, %v843_v6  ;;  %vm1546_vm7 = vmor %vm879_vm5, %vm880_vm3  ;;  %vm894_vm10 = vweird.f32 %v843_v6 }
 0x16e   : > { %v876_v10 = vsub.f32 1.0, %v875_v7  ;;  %v867_v38 = vsel %vm1557_vm11, %v1241_v3, %v863_v25  ;;  %vm854_vm3 = vcmp.eq.f32.partialorder %v853_v35, 8.507059e+37 }
 0x16f   : > { %v901_v33 = vor.u32 1.1754944e-38, %v900_v20  ;;  %vm899_vm13 = vcmp.eq.f32.partialorder %v898_v24, 8.507059e+37  ;;  %v872_v44 = vsel %vm869_vm1, %v871_v41, %v867_v38  ;;  %v857_v47 = vsel %vm854_vm3, %v856_v45, %v852_v43 }
 0x170   : > { %v877_v13 = vmul.f32 %v1245_v5, %v876_v10  ;;  %v905_v48 = vmul.f32 %v872_v44, %v1526_v51  ;;  %v904_v50 = vmul.f32 %v857_v47, %v1524_v49  ;;  %v933_v49 = vld [vmem:[%s1663_s11 + $0x8] sm:$0xff]  ;;  %v932_v51 = vld [vmem:[%s1663_s11] sm:$0xff] }
 0x172   : > { %v878_v19 = vadd.f32 %v1245_v5, %v877_v13 }
 0x173   : > { %v1247_v14 = vpop.eup %1246 }
 0x174   : > { %v890_v15 = vmul.f32 %v1247_v14, %v843_v6  ;;  %vm895_vm6 = vweird.f32 %v1247_v14  ;;  %v882_v30 = vsel %vm1546_vm7, %v1245_v5, %v878_v19 }
 0x175   : > { %vm896_vm12 = vmor %vm894_vm10, %vm895_vm6  ;;  %v887_v40 = vsel %vm884_vm14, %v886_v34, %v882_v30 }
 0x176   : > { %v891_v18 = vsub.f32 1.0, %v890_v15  ;;  %v906_v46 = vmul.f32 %v887_v40, %v1530_v55  ;;  %v967_v55 = vld [vmem:[%s1665_s13 + $0x18] sm:$0xff] }
 0x178   : > { %v892_v23 = vmul.f32 %v1247_v14, %v891_v18 }
 0x17a   : > { %v893_v29 = vadd.f32 %v1247_v14, %v892_v23 }
 0x17c   : > { %v897_v37 = vsel %vm896_vm12, %v1247_v14, %v893_v29 }
 0x17d   : > { %v902_v39 = vsel %vm899_vm13, %v901_v33, %v897_v37 }
 0x17e   : > { %v907_v42 = vmul.f32 %v902_v39, %v826_v62 }
 0x180   : > { %924 = vmatpush.msra.mxu3 %v907_v42 }
 0x182   : > { %925 = vmatpush.msra.mxu3 %v906_v46 }
 0x184   : > { %926 = vmatpush.msra.mxu3 %v905_v48 }
 0x186   : > { %927 = vmatpush.msra.mxu3 %v904_v50 }
 0x187   : > { %1161 = vmatmul.msk.f32.vlgmr.msra.gmra.mxu3 %vm572_vm0, %v908_v52 }
 0x188   : > { %955 = vmatpush.msrb.mxu3 %v935_v53 }
 0x18a   : > { %956 = vmatpush.msrb.mxu3 %v934_v54 }
 0x18c   : > { %957 = vmatpush.msrb.mxu3 %v933_v49 }
 0x18e   : > { %958 = vmatpush.msrb.mxu3 %v932_v51 }
 0x190   : > { %987 = vmatpush.msra.mxu3 %v967_v55 }
 0x192   : > { %988 = vmatpush.msra.mxu3 %v966_v56 }
 0x194   : > { %989 = vmatpush.msra.mxu3 %v965_v58 }
 0x196   : > { %990 = vmatpush.msra.mxu3 %v964_v59 }
 0x20a   : > { %v929_v57 = vpop.f32.mrf.mxu3 }
 0x20b   : > { %1162 = vmatmul.msk.f32.vlgmr.msrb.gmra.mxu3 %vm572_vm0, %v929_v57 }
 0x28e   : > { %v960_v61 = vpop.f32.mrf.mxu3 }
 0x28f   : > { %v961_v62 = vadd.f32 %v1214_v60, %v960_v61 }
 0x291   : > { %v963_v63 = vmax.f32 %v961_v62, 0.0 }
 0x293   : > { %1163 = vmatmul.msk.f32.vlgmr.msra.gmra.mxu3 %vm572_vm0, %v963_v63 }
 0x316   : > { %v992_v1 = vpop.f32.mrf.mxu3 }
 0x317   : > { %v993_v2 = vadd.f32 %v1215_v0, %v992_v1 }
 0x319   : > { %v1164_v3 = vmul.f32 -1.442695, %v993_v2 }
 0x31b   : > { %1248 = vpow2.f32 %v1164_v3 }
 0x321   : > { %v1249_v4 = vpop.eup %1248 }
 0x322   : > { %v998_v5 = vadd.f32 1.0, %v1249_v4 }
 0x324   : > { %1250 = vrcp.f32 %v998_v5  ;;  %v1010_v9 = vand.u32 2147483648, %v998_v5  ;;  %v1008_v11 = vand.u32 2147483647, %v998_v5  ;;  %vm1004_vm4 = vweird.f32 %v998_v5 }
 0x326   : > { %v1011_v13 = vor.u32 1.1754944e-38, %v1010_v9  ;;  %vm1009_vm6 = vcmp.eq.f32.partialorder %v1008_v11, 8.507059e+37 }
 0x32a   : > { %v1251_v6 = vpop.eup %1250 }
 0x32b   : > { %v1000_v7 = vmul.f32 %v1251_v6, %v998_v5  ;;  %vm1005_vm2 = vweird.f32 %v1251_v6 }
 0x32c   : > { %vm1006_vm5 = vmor %vm1004_vm4, %vm1005_vm2 }
 0x32d   : > { %v1001_v8 = vsub.f32 1.0, %v1000_v7 }
 0x32f   : > { %v1002_v10 = vmul.f32 %v1251_v6, %v1001_v8 }
 0x331   : > { %v1003_v12 = vadd.f32 %v1251_v6, %v1002_v10 }
 0x333   : > { %v1007_v14 = vsel %vm1006_vm5, %v1251_v6, %v1003_v12 }
 0x334   : > { %v1012_v15 = vsel %vm1009_vm6, %v1011_v13, %v1007_v14 }
 0x335   : > { %v1015_v17 = vmul.f32 %v1012_v15, %v929_v57 }
 0x337   : > { %v1016_v18 = vadd.f32 %v1015_v17, %v1014_v16 }
 0x339   : > { %1017 = vst.msk [vmem:[%s533_s22] sm:$0xff] %vm572_vm0, %v1016_v18 }
 0x33a   : > { %1279 = shalt.err (!%p1276_p4)
}
 0x33b   : > { %1169 = dma.vmem_to_hbm [thread:$0]  (%p1435_p5), %s1032_s20, 128, %s1034_s24, %s1019_s18  }
 0x33c PF: > { %s1688_s27 = sld [smem:[#allocation7_spill]] }
 0x33d   : > { %s1689_s23 = sld [smem:[#allocation5_spill]] }
 0x342   : > { %p1175_p7 = scmp.ge.s32.totalorder %s1688_s27, 2 }
 0x343   : > { %s1045_s0 = sand.u32 1, %s1689_s23  }
 0x344   : > { %p1172_p8 = pnand %p1175_p7, %p1439_p6  ;;  %s1046_s21 = scalar_lea.sflag [#allocation3], %s1045_s0 }
 0x346   : > { %p1173_p9 = pneg %p1172_p8 }
 0x348   : > { %1297 = dma.done.wait (%p1173_p9), %s1046_s21, 128  }
 0x349   : > { %1299 = vsyncadd (%p1173_p9), %s1046_s21, 4294967168  ;;  %s1691_s21 = sld [smem:[#allocation8_spill]]  ;;  %s1694_s18 = smov %s1306_s19 }
 0x34a   : > { %s1692_s30 = sld [smem:[#allocation6_spill]] }
 0x34b   : > { %s1693_s20 = sld [smem:[#allocation9_spill]] }
 0x34f   : > { %p25_p10 = scmp.ge.s32.totalorder %s1691_s21, 4  }
 0x350   : > { %s1695_s19 = smov %s1692_s30 }
 0x351   :  { %27 = sbr.rel (!%p25_p10) target bundleno = 5 (0x5), region = 124 }
 0x356   :  { %1052 = vsyncpa [#allocation3], 1 }
 0x357   :  { %1054 = vsyncpa [#allocation3 + $0x1], 1 }

</bundles_post_ra>
